<compile_context>
chip_gen: v7x
topology: tpu7x:2x2x1
jax: 0.10.0
libtpu: 0.0.40
codegen_flags: <defaults>
</compile_context>

<pallas_src>
import numpy as np
import jax
import jax.numpy as jnp
from jax.experimental import pallas as pl
from jax.experimental.pallas import tpu as pltpu

try:  # host-side labeling helper (matches the PyTorch module's scipy path)
    from scipy import ndimage as _ndimage
except ImportError:  # pragma: no cover
    _ndimage = None


# ----------------------------- tiling choice ------------------------------ #

_LANE = 128
_MAX_CHUNK = 64 * 1024   # lanes per pipelined block (multiple of 128).
                         # ~6.6 MB double-buffered working set -> fits the
                         # default scoped VMEM on v5e/v6e/v7x with headroom.


def _choose_tiling(hw, max_chunk=_MAX_CHUNK):
    """Return (chunk, n_chunks, hw_pad).

    chunk is a multiple of 128 lanes, hw_pad = chunk * n_chunks >= hw with at
    most n_chunks*128 lanes of padding (no degenerate 128-lane chunks, no
    whole-row fallback that could blow the scoped VMEM budget)."""
    n_chunks = max(1, -(-hw // max_chunk))              # ceil(hw / max_chunk)
    chunk = -(-hw // (n_chunks * _LANE)) * _LANE        # ceil to a lane multiple
    return chunk, n_chunks, chunk * n_chunks


# ----------------------------- Pallas kernel ------------------------------ #

def _agg_kernel(order_ref, sids_ref, mask_ref, qsz_ref, xy_ref,
                psum_ref, pcnt_ref, xyo_ref):
    # grid = (HW chunk c, sorted instance j).  The scalar-prefetch refs
    # (order, sorted sample ids) are only used by the index_maps.
    del order_ref, sids_ref

    m = mask_ref[0].astype(jnp.float32)            # (1, chunk)  {0,1}
    d = qsz_ref[0].astype(jnp.float32)             # (8, chunk)  quat|scales|z
    xy = xy_ref[0].astype(jnp.float32)             # (2, chunk)

    # 'xy': masked per-pixel product, streamed straight back out per chunk.
    xyo_ref[0] = (xy * m).astype(xyo_ref.dtype)

    # Per-chunk masked channel sums + mask pixel count.  Final divide / exp /
    # quaternion-normalize happens in a tiny plain-JAX epilogue (exact
    # reference numerics, no in-kernel accumulator state needed).
    psum_ref[0, 0] = jnp.sum(d * m, axis=-1, keepdims=True)    # (8, 1)
    pcnt_ref[0, 0] = jnp.sum(m, axis=-1, keepdims=True)        # (1, 1)


# ------------------------------ host wrapper ------------------------------ #

def aggregate_instances(instance_masks, quat, scales, z, xy, sample_ids,
                        *, stream_dtype=jnp.float32, xy_out_dtype=None):
    """instance_masks (N,H,W); quat (B,4,H,W); scales (B,3,H,W); z (B,H,W);
    xy (B,2,H,W); sample_ids (N,) int32 (batch index per instance).

    Returns (quat (N,4), scales (N,3), z (N,1), xy_masked (N,2,H,W)).

    stream_dtype: dtype the mask / data slabs are streamed through HBM with
    (jnp.bfloat16 halves read traffic; default float32 for exact parity).
    xy_out_dtype: dtype of the masked xy output (default: xy.dtype)."""
    N, H, W = instance_masks.shape
    B = quat.shape[0]
    HW = H * W
    if xy_out_dtype is None:
        xy_out_dtype = xy.dtype

    chunk, n_chunks, hw_pad = _choose_tiling(HW)
    pad = hw_pad - HW

    def prep(a):
        # Zero-pad HW up to chunk*n_chunks (fuses with the concat / cast that
        # materializes these slabs anyway) and cast to the streaming dtype.
        if pad:
            a = jnp.pad(a, ((0, 0), (0, 0), (0, pad)))
        return a if a.dtype == stream_dtype else a.astype(stream_dtype)

    masks = prep(instance_masks.reshape(N, 1, HW))
    # Reduce slab: quat 0:4 | scales 4:7 | z 7 -> exactly one 8-row f32 tile.
    qsz = prep(jnp.concatenate(
        [quat.reshape(B, 4, HW), scales.reshape(B, 3, HW),
         z.reshape(B, 1, HW)], axis=1))
    # xy streamed on its own (reshape is free; it is not part of the reduce).
    xy2 = prep(xy.reshape(B, 2, HW))

    # Sort instances by sample id so consecutive inner grid steps that share an
    # image hit the SAME per-image data/xy block and Pallas skips the re-DMA.
    # Outputs are scattered to original instance positions via order[j].
    sample_ids = sample_ids.astype(jnp.int32)
    order = jnp.argsort(sample_ids).astype(jnp.int32)      # slot j -> instance
    sids_sorted = jnp.take(sample_ids, order)               # slot j -> image

    grid_spec = pltpu.PrefetchScalarGridSpec(
        num_scalar_prefetch=2,                 # order, sorted sample ids -> SMEM
        grid=(n_chunks, N),                    # chunk outer, instance inner
        in_specs=[
            # per-instance mask chunk (gathered via the order table)
            pl.BlockSpec((1, 1, chunk),
                         lambda c, j, order, sids: (order[j], 0, c)),
            # per-image quat|scales|z chunk (gathered via sorted sample ids;
            # unchanged across consecutive instances of the same image -> the
            # DMA is skipped)
            pl.BlockSpec((1, 8, chunk),
                         lambda c, j, order, sids: (sids[j], 0, c)),
            # per-image xy chunk (same dedup)
            pl.BlockSpec((1, 2, chunk),
                         lambda c, j, order, sids: (sids[j], 0, c)),
        ],
        out_specs=[
            # per-(chunk, instance) masked channel sums, scattered to the
            # original instance position
            pl.BlockSpec((1, 1, 8, 1),
                         lambda c, j, order, sids: (c, order[j], 0, 0)),
            # per-(chunk, instance) mask pixel count
            pl.BlockSpec((1, 1, 1, 1),
                         lambda c, j, order, sids: (c, order[j], 0, 0)),
            # masked xy, streamed out per chunk
            pl.BlockSpec((1, 2, chunk),
                         lambda c, j, order, sids: (order[j], 0, c)),
        ],
    )

    psums, pcnts, xyo = pl.pallas_call(
        _agg_kernel,
        out_shape=(
            jax.ShapeDtypeStruct((n_chunks, N, 8, 1), jnp.float32),
            jax.ShapeDtypeStruct((n_chunks, N, 1, 1), jnp.float32),
            jax.ShapeDtypeStruct((N, 2, hw_pad), xy_out_dtype),
        ),
        grid_spec=grid_spec,
        # HBM-bound kernel; the dedup byte reduction beats the v7x megacore
        # split (both TCs share HBM BW), so both axes stay "arbitrary".
        compiler_params=pltpu.CompilerParams(
            dimension_semantics=("arbitrary", "arbitrary")),
    )(order, sids_sorted, masks, qsz, xy2)

    # Tiny exact finalize in plain JAX (matches the PyTorch reference:
    # exact division, exp(mean of masked z), F.normalize(quat, eps=1e-12)).
    sums = jnp.sum(psums, axis=0).reshape(N, 8)
    cnts = jnp.sum(pcnts, axis=0).reshape(N, 1)
    means = sums / cnts
    quat_agg = means[:, 0:4]
    q_norm = jnp.sqrt(jnp.sum(quat_agg * quat_agg, axis=1, keepdims=True))
    quat_agg = quat_agg / jnp.maximum(q_norm, 1e-12)
    scales_agg = means[:, 4:7]
    z_agg = jnp.exp(means[:, 7:8])

    xy_masked = xyo
    if pad:
        xy_masked = xy_masked[:, :, :HW]
    xy_masked = xy_masked.reshape(N, 2, H, W)

    return quat_agg, scales_agg, z_agg, xy_masked


# ------------------------ host-side glue (labeling) ------------------------ #

# 4-connected in-plane structure; no connectivity across the batch dimension
# (matches the PyTorch module's `self.s`).
_CROSS_STRUCTURE = np.array(
    [[[False, False, False], [False, False, False], [False, False, False]],
     [[False, True, False], [True, True, True], [False, True, False]],
     [[False, False, False], [False, False, False], [False, False, False]]])


def _label_4conn(binary):
    """Pure-numpy fallback for scipy.ndimage.label with the cross structure."""
    # TODO(synk): connected-component labeling has no clean Pallas equivalent;
    # it stays on the host (scipy when available, this flood-fill otherwise).
    B, H, W = binary.shape
    labels = np.zeros((B, H, W), dtype=np.int64)
    cur = 0
    for b in range(B):
        for y in range(H):
            for x in range(W):
                if binary[b, y, x] and labels[b, y, x] == 0:
                    cur += 1
                    labels[b, y, x] = cur
                    stack = [(y, x)]
                    while stack:
                        cy, cx = stack.pop()
                        for dy, dx in ((1, 0), (-1, 0), (0, 1), (0, -1)):
                            ny, nx = cy + dy, cx + dx
                            if (0 <= ny < H and 0 <= nx < W
                                    and binary[b, ny, nx]
                                    and labels[b, ny, nx] == 0):
                                labels[b, ny, nx] = cur
                                stack.append((ny, nx))
    return labels, cur


def _label_instances(binary):
    if _ndimage is not None:
        labels, num = _ndimage.label(binary, structure=_CROSS_STRUCTURE)
        return labels, int(num)
    return _label_4conn(binary)


class AggregationLayerJAX:
    def __init__(self, classes, stream_dtype=jnp.float32, xy_out_dtype=None):
        self.classes = classes
        self.stream_dtype = stream_dtype
        self.xy_out_dtype = xy_out_dtype

    def __call__(self, cat_mask, data):
        cat_np = np.asarray(cat_mask)
        b, h, w = cat_np.shape

        class_ids, sample_ids, inst_masks = [], [], []
        for class_id in range(1, self.classes):
            class_mask = (cat_np == class_id)
            labels, num = _label_instances(class_mask)
            for i in range(1, num + 1):
                # first batch index where label i appears
                element_id = int(np.where((labels == i).any(axis=(1, 2)))[0][0])
                inst_masks.append((labels[element_id] == i).astype(np.float32))
                sample_ids.append(element_id)
                class_ids.append(class_id)

        if not inst_masks:
            return {
                'class_ids': jnp.zeros((0,), jnp.int32),
                'instance_masks': jnp.zeros((0, h, w), jnp.float32),
                'sample_ids': jnp.zeros((0,), jnp.int32),
                'quaternion': jnp.zeros((0, 4), jnp.float32),
                'scales': jnp.zeros((0, 3), jnp.float32),
                'xy': jnp.zeros((0, 2, h, w), jnp.float32),
                'z': jnp.zeros((0, 1), jnp.float32),
            }

        instance_masks = jnp.asarray(np.stack(inst_masks, axis=0))        # (N,H,W)
        sample_ids = jnp.asarray(np.asarray(sample_ids, dtype=np.int32))  # (N,)
        class_ids = jnp.asarray(np.asarray(class_ids, dtype=np.int32))    # (N,)

        q_agg, s_agg, z_agg, xy_agg = aggregate_instances(
            instance_masks, data['quaternion'], data['scales'],
            data['z'], data['xy'], sample_ids,
            stream_dtype=self.stream_dtype, xy_out_dtype=self.xy_out_dtype)

        return {
            'class_ids': class_ids,
            'instance_masks': instance_masks,
            'sample_ids': sample_ids,
            'quaternion': q_agg,
            'scales': s_agg,
            'xy': xy_agg,
            'z': z_agg,
        }


# --------------------------------- demo ----------------------------------- #

if __name__ == "__main__":
    key = jax.random.PRNGKey(0)
    B, H, W = 2, 16, 16
    classes = 3

    k1, k2, k3, k4, k5 = jax.random.split(key, 5)
    # Blocky category mask (4x4 super-pixels) -> a handful of instances,
    # several of which share a batch index (exercises the DMA dedup path).
    coarse = jax.random.randint(k1, (B, 4, 4), 0, classes)
    cat_mask = jnp.repeat(jnp.repeat(coarse, 4, axis=1), 4, axis=2)   # (B,16,16)

    data = {
        'quaternion': jax.random.normal(k2, (B, 4, H, W), jnp.float32),
        'scales': jax.random.normal(k3, (B, 3, H, W), jnp.float32),
        'xy': jax.random.normal(k4, (B, 2, H, W), jnp.float32),
        'z': jax.random.normal(k5, (B, H, W), jnp.float32) * 0.1,
    }

    layer = AggregationLayerJAX(classes=classes)
    out = layer(cat_mask, data)
    jax.block_until_ready(out)
    print("KERNEL_OK")
</pallas_src>

<mosaic_0001>
module attributes {stable_mosaic.version = 11 : i64} {
  func.func @_agg_kernel(%arg0: i32, %arg1: i32, %arg2: memref<11xi32, #tpu.memory_space<smem>>, %arg3: memref<11xi32, #tpu.memory_space<smem>>, %arg4: memref<1x1x256xf32, #tpu.memory_space<vmem>>, %arg5: memref<1x8x256xf32, #tpu.memory_space<vmem>>, %arg6: memref<1x2x256xf32, #tpu.memory_space<vmem>>, %arg7: memref<1x1x8x1xf32, #tpu.memory_space<vmem>>, %arg8: memref<1x1x1x1xf32, #tpu.memory_space<vmem>>, %arg9: memref<1x2x256xf32, #tpu.memory_space<vmem>>) attributes {dimension_semantics = [#tpu.dimension_semantics<arbitrary>, #tpu.dimension_semantics<arbitrary>], iteration_bounds = array<i64: 1, 11>, scalar_prefetch = 2 : i64, scratch_operands = 0 : i64, tpu.core_type = #tpu.core_type<tc>, window_params = [{transform_indices = @transform_0, window_bounds = array<i64: 1, 1, 256>}, {transform_indices = @transform_1, window_bounds = array<i64: 1, 8, 256>}, {transform_indices = @transform_2, window_bounds = array<i64: 1, 2, 256>}, {transform_indices = @transform_3, window_bounds = array<i64: 1, 1, 8, 1>}, {transform_indices = @transform_4, window_bounds = array<i64: 1, 1, 1, 1>}, {transform_indices = @transform_5, window_bounds = array<i64: 1, 2, 256>}]} {
    %c0 = arith.constant 0 : index
    %c0_0 = arith.constant 0 : index
    %c0_1 = arith.constant 0 : index
    %0 = vector.load %arg4[%c0, %c0_0, %c0_1] : memref<1x1x256xf32, #tpu.memory_space<vmem>>, vector<1x1x256xf32>
    %1 = vector.shape_cast %0 : vector<1x1x256xf32> to vector<1x256xf32>
    %c0_2 = arith.constant 0 : index
    %c0_3 = arith.constant 0 : index
    %c0_4 = arith.constant 0 : index
    %2 = vector.load %arg5[%c0_2, %c0_3, %c0_4] : memref<1x8x256xf32, #tpu.memory_space<vmem>>, vector<1x8x256xf32>
    %3 = vector.shape_cast %2 : vector<1x8x256xf32> to vector<8x256xf32>
    %c0_5 = arith.constant 0 : index
    %c0_6 = arith.constant 0 : index
    %c0_7 = arith.constant 0 : index
    %4 = vector.load %arg6[%c0_5, %c0_6, %c0_7] : memref<1x2x256xf32, #tpu.memory_space<vmem>>, vector<1x2x256xf32>
    %5 = vector.shape_cast %4 : vector<1x2x256xf32> to vector<2x256xf32>
    %6 = vector.broadcast %1 : vector<1x256xf32> to vector<2x256xf32>
    %7 = arith.mulf %5, %6 : vector<2x256xf32>
    %c0_8 = arith.constant 0 : index
    %c0_9 = arith.constant 0 : index
    %c0_10 = arith.constant 0 : index
    %8 = vector.load %arg9[%c0_8, %c0_9, %c0_10] : memref<1x2x256xf32, #tpu.memory_space<vmem>>, vector<1x2x256xf32>
    %9 = vector.shape_cast %8 : vector<1x2x256xf32> to vector<2x256xf32>
    %10 = vector.shape_cast %7 : vector<2x256xf32> to vector<1x2x256xf32>
    tpu.vector_store %arg9[%c0_8, %c0_9, %c0_10], %10 {strides = array<i32>} : memref<1x2x256xf32, #tpu.memory_space<vmem>>, vector<1x2x256xf32>,
    %11 = vector.broadcast %1 : vector<1x256xf32> to vector<8x256xf32>
    %12 = arith.mulf %3, %11 : vector<8x256xf32>
    %cst = arith.constant dense<0.000000e+00> : vector<8xf32>
    %13 = vector.multi_reduction <add>, %12, %cst [1] : vector<8x256xf32> to vector<8xf32>
    %14 = vector.shape_cast %13 : vector<8xf32> to vector<8x1xf32>
    %c0_11 = arith.constant 0 : index
    %c0_12 = arith.constant 0 : index
    %c0_13 = arith.constant 0 : index
    %c0_14 = arith.constant 0 : index
    %15 = vector.load %arg7[%c0_11, %c0_12, %c0_13, %c0_14] : memref<1x1x8x1xf32, #tpu.memory_space<vmem>>, vector<1x1x8x1xf32>
    %16 = vector.shape_cast %15 : vector<1x1x8x1xf32> to vector<8x1xf32>
    %17 = vector.shape_cast %14 : vector<8x1xf32> to vector<1x1x8x1xf32>
    tpu.vector_store %arg7[%c0_11, %c0_12, %c0_13, %c0_14], %17 {strides = array<i32>} : memref<1x1x8x1xf32, #tpu.memory_space<vmem>>, vector<1x1x8x1xf32>,
    %cst_15 = arith.constant dense<0.000000e+00> : vector<1xf32>
    %18 = vector.multi_reduction <add>, %1, %cst_15 [1] : vector<1x256xf32> to vector<1xf32>
    %19 = vector.shape_cast %18 : vector<1xf32> to vector<1x1xf32>
    %c0_16 = arith.constant 0 : index
    %c0_17 = arith.constant 0 : index
    %c0_18 = arith.constant 0 : index
    %c0_19 = arith.constant 0 : index
    %20 = vector.load %arg8[%c0_16, %c0_17, %c0_18, %c0_19] : memref<1x1x1x1xf32, #tpu.memory_space<vmem>>, vector<1x1x1x1xf32>
    %21 = vector.shape_cast %20 : vector<1x1x1x1xf32> to vector<1x1xf32>
    %22 = vector.shape_cast %19 : vector<1x1xf32> to vector<1x1x1x1xf32>
    tpu.vector_store %arg8[%c0_16, %c0_17, %c0_18, %c0_19], %22 {strides = array<i32>} : memref<1x1x1x1xf32, #tpu.memory_space<vmem>>, vector<1x1x1x1xf32>,
    return
  }
  func.func @transform_0(%arg0: i32, %arg1: i32, %arg2: memref<11xi32, #tpu.memory_space<smem>>, %arg3: memref<11xi32, #tpu.memory_space<smem>>) -> (i32, i32, i32) {
    %0 = arith.index_cast %arg1 : i32 to index
    %1 = memref.load %arg2[%0] : memref<11xi32, #tpu.memory_space<smem>>
    %c0_i32 = arith.constant 0 : i32
    %c0_i32_0 = arith.constant 0 : i32
    return %1, %c0_i32, %arg0 : i32, i32, i32
  }
  func.func @transform_1(%arg0: i32, %arg1: i32, %arg2: memref<11xi32, #tpu.memory_space<smem>>, %arg3: memref<11xi32, #tpu.memory_space<smem>>) -> (i32, i32, i32) {
    %0 = arith.index_cast %arg1 : i32 to index
    %1 = memref.load %arg3[%0] : memref<11xi32, #tpu.memory_space<smem>>
    %c0_i32 = arith.constant 0 : i32
    %c0_i32_0 = arith.constant 0 : i32
    return %1, %c0_i32, %arg0 : i32, i32, i32
  }
  func.func @transform_2(%arg0: i32, %arg1: i32, %arg2: memref<11xi32, #tpu.memory_space<smem>>, %arg3: memref<11xi32, #tpu.memory_space<smem>>) -> (i32, i32, i32) {
    %0 = arith.index_cast %arg1 : i32 to index
    %1 = memref.load %arg3[%0] : memref<11xi32, #tpu.memory_space<smem>>
    %c0_i32 = arith.constant 0 : i32
    %c0_i32_0 = arith.constant 0 : i32
    return %1, %c0_i32, %arg0 : i32, i32, i32
  }
  func.func @transform_3(%arg0: i32, %arg1: i32, %arg2: memref<11xi32, #tpu.memory_space<smem>>, %arg3: memref<11xi32, #tpu.memory_space<smem>>) -> (i32, i32, i32, i32) {
    %0 = arith.index_cast %arg1 : i32 to index
    %1 = memref.load %arg2[%0] : memref<11xi32, #tpu.memory_space<smem>>
    %c0_i32 = arith.constant 0 : i32
    %c0_i32_0 = arith.constant 0 : i32
    %c0_i32_1 = arith.constant 0 : i32
    return %arg0, %1, %c0_i32, %c0_i32_0 : i32, i32, i32, i32
  }
  func.func @transform_4(%arg0: i32, %arg1: i32, %arg2: memref<11xi32, #tpu.memory_space<smem>>, %arg3: memref<11xi32, #tpu.memory_space<smem>>) -> (i32, i32, i32, i32) {
    %0 = arith.index_cast %arg1 : i32 to index
    %1 = memref.load %arg2[%0] : memref<11xi32, #tpu.memory_space<smem>>
    %c0_i32 = arith.constant 0 : i32
    %c0_i32_0 = arith.constant 0 : i32
    %c0_i32_1 = arith.constant 0 : i32
    return %arg0, %1, %c0_i32, %c0_i32_0 : i32, i32, i32, i32
  }
  func.func @transform_5(%arg0: i32, %arg1: i32, %arg2: memref<11xi32, #tpu.memory_space<smem>>, %arg3: memref<11xi32, #tpu.memory_space<smem>>) -> (i32, i32, i32) {
    %0 = arith.index_cast %arg1 : i32 to index
    %1 = memref.load %arg2[%0] : memref<11xi32, #tpu.memory_space<smem>>
    %c0_i32 = arith.constant 0 : i32
    %c0_i32_0 = arith.constant 0 : i32
    return %1, %c0_i32, %arg0 : i32, i32, i32
  }
}

</mosaic_0001>

<bundles_post_ra>
// kernel: tpu_custom_call.1
= control target key start
LH: loop header
LB: loop body
LE: loop exit
PB: predicated region body
PF: predicated region fallthrough
CT: control target
= control target key end

     0   :  { %s1459_s0 = inlined_call_operand.hbm [shape: s32[11], index: 0, kind: input, shape index: {}]   ;;  %s1460_s2 = inlined_call_operand.hbm [shape: f32[11,1,256], index: 2, kind: input, shape index: {}]   ;;  %s1461_s3 = inlined_call_operand.hbm [shape: f32[2,8,256], index: 3, kind: input, shape index: {}]   ;;  %s1462_s4 = inlined_call_operand.vmem [shape: f32[2,2,256], index: 4, kind: input, shape index: {}]   ;;  %s1463_s5 = inlined_call_operand.vmem [shape: f32[1,11,8,1], index: 5, kind: output, shape index: {0}]   ;;  %s1464_s6 = inlined_call_operand.vmem [shape: f32[1,11,1,1], index: 6, kind: output, shape index: {1}]   ;;  %s1465_s7 = inlined_call_operand.hbm [shape: f32[11,2,256], index: 7, kind: output, shape index: {2}]   ;;  %s1466_s1 = inlined_call_operand.vmem [shape: s32[11], index: 1, kind: input, shape index: {}]  }
   0x1   :  { %1474 = sst [smem:[#allocation25_spill]] %s1460_s2  ;;  %s852_s26 = scalar_lea.hbm %s1459_s0, 16 }
   0x2   :  { %1475 = sst [smem:[#allocation26_spill]] %s1463_s5  ;;  %p853_p0 = scmp.ne.s32.totalorder %s1459_s0, %s852_s26 }
   0x3   :  { %1476 = sst [smem:[#allocation27_spill]] %s1464_s6  ;;  %p856_p1 = scmp.lt.u32.totalorder %s852_s26, %s1459_s0 }
   0x5   :  { %p858_p2 = pnand %p856_p1, %p853_p0 }
   0x7   :  { %861 = shalt.err (!%p858_p2)  }
   0x8   :  { %s1072_s8 = smov [#allocation3]   ;;  %s15_s13 = sshll.u32 %s1466_s1, 4  ;;  %s16_s13 = int_to_ptr.vmem [resolvable:$true] %s15_s13 }
   0x9   :  { %14 = dma.hbm_to_smem %s1459_s0, 16, %s1072_s8, [#allocation2] }
   0xa   :  { %s862_s14 = scalar_lea.vmem %s16_s13, 16  ;;  %p867_p4 = scmp.lt.s32.totalorder %s16_s13, %s16_s13 }
   0xb   :  { %p863_p3 = scmp.ne.s32.totalorder %s16_s13, %s862_s14  ;;  %p868_p5 = scmp.lt.s32.totalorder %s862_s14, %s862_s14 }
   0xd   :  { %p869_p6 = por %p868_p5, %p867_p4 }
   0xf   :  { %p870_p7 = pnand %p869_p6, %p863_p3 }
  0x11   :  { %873 = shalt.err (!%p870_p7)  }
  0x12   :  { %s1073_s15 = smov [#allocation4]  }
  0x13   :  { %18 = dma.vmem_to_smem %s16_s13, 16, %s1073_s15, [#allocation2] }
  0x14   :  { %1010 = dma.done.wait [#allocation2], 32 }
  0x15   :  { %1011 = vsyncadd [#allocation2], 4294967264 }
  0x16   :  { %20 = sfence }
  0x17   :  { %21 = vsyncpa [#allocation6], 0 }
  0x18   :  { %23 = vsyncpa [#allocation6 + $0x1], 0 }
  0x19   :  { %24 = vsyncpa [#allocation9], 0 }
  0x1a   :  { %26 = vsyncpa [#allocation9 + $0x1], 0 }
  0x1b   :  { %27 = vsyncpa [#allocation7], 0 }
  0x1c   :  { %29 = vsyncpa [#allocation7 + $0x1], 0  ;;  %s1133_s0 = smov 0   ;;  %s1135_s1 = smov 0  }
  0x1d   :  { %s1137_s16 = smov 0   ;;  %s1139_s17 = smov 0  }
  0x1e   :  { %s1141_s18 = smov 0   ;;  %s1143_s19 = smov 0  }
  0x1f   :  { %s1145_s20 = smov 0   ;;  %s1147_s21 = smov 0  }
  0x20   :  { %s1149_s22 = smov 0   ;;  %s1151_s23 = smov 0  }
  0x21   :  { %s1153_s24 = smov 0   ;;  %s1155_s25 = smov 0  }
  0x22 LB: > { %1477 = sst [smem:[#allocation20_spill]] %s1026_s0  ;;  %s698_s26 = sadd.s32 4294967295, %s1070_s25   ;;  %s1070_s25 = sphi %s1155_s25, %s35_s25   ;;  %s1066_s24 = sphi %s1153_s24, %s1516_s24   ;;  %s1062_s23 = sphi %s1151_s23, %s1515_s23   ;;  %s1058_s22 = sphi %s1149_s22, %s1507_s22   ;;  %s1054_s21 = sphi %s1147_s21, %s1514_s21   ;;  %s1050_s20 = sphi %s1145_s20, %s1513_s20   ;;  %s1046_s19 = sphi %s1143_s19, %s1512_s19   ;;  %s1042_s18 = sphi %s1141_s18, %s1511_s18   ;;  %s1038_s17 = sphi %s1139_s17, %s1510_s17   ;;  %s1034_s16 = sphi %s1137_s16, %s1505_s16   ;;  %s1030_s1 = sphi %s1135_s1, %s1509_s1   ;;  %s1026_s0 = sphi %s1133_s0, %s1508_s0  }
  0x23   : > { %1478 = sst [smem:[#allocation21_spill]] %s1034_s16  ;;  %s699_s27 = sadd.s32 4294967294, %s1070_s25  }
  0x24   : > { %1479 = sst [smem:[#allocation22_spill]] %s1058_s22  ;;  %s44_s28 = sadd.s32 1, %s1066_s24 }
  0x25   : > { %s51_s29 = sld [smem:[#allocation3 + %s1066_s24]]  ;;  %p45_p8 = scmp.ge.s32.totalorder %s44_s28, 11 }
  0x26   : > { %s58_s30 = sadd.s32 1, %s1058_s22  ;;  %p65_p9 = scmp.ne.s32.totalorder %s1058_s22, %s1054_s21 }
  0x27   : > { %p1471_p10 = scmp.eq.s32.totalorder %s1070_s25, 0  ;;  %s1518_s28 = smov (%p45_p8, %s44_s28), 0 }
  0x28   : > { %p71_p12 = scmp.ne.s32.totalorder %s1054_s21, %s1050_s20  ;;  %s52_s9 = sld [smem:[#allocation3 + %s1518_s28]] }
  0x29   : > { %p1203_p11 = por %p1471_p10, %p65_p9  ;;  %p1209_p13 = scmp.eq.s32.totalorder %s698_s26, 0 }
  0x2a   : > { %s201_s11 = sld [smem:[#allocation3 + %s1066_s24]]  ;;  %s208_s14 = sadd.s32 1, %s1034_s16 }
  0x2b   : > { %s202_s12 = sld [smem:[#allocation3 + %s1518_s28]]  ;;  %p1217_p0 = por %p1209_p13, %p71_p12 }
  0x2c   : > { %p218_p1 = scmp.ne.s32.totalorder %s1034_s16, %s1030_s1  ;;  %p219_p2 = scmp.eq.s32.totalorder %s698_s26, 10 }
  0x2d   : > { %s1482_s13 = scalar_select %p1217_p0, 1, 0 }
  0x2e   : > { %p224_p3 = scmp.ne.s32.totalorder %s1030_s1, %s1026_s0  ;;  %p225_p4 = scmp.eq.s32.totalorder %s699_s27, 10 }
  0x2f   : > { %p1226_p5 = por %p219_p2, %p218_p1  ;;  %s53_s20 = ssub.s32 %s51_s29, %s52_s9 }
  0x30   : > { %p1230_p6 = por %p225_p4, %p224_p3  ;;  %p56_p7 = scmp.eq.s32.totalorder %s53_s20, 0 }
  0x31   : > { %s1483_s15 = scalar_select %p1226_p5, 1, 0 }
  0x32   : > { %s1484_s6 = scalar_select %p1230_p6, 1, 0 }
  0x33   : > { %s203_s5 = ssub.s32 %s201_s11, %s202_s12  ;;  %p1470_p9 = scmp.lt.s32.totalorder %s1070_s25, 11 }
  0x34   : > { %p206_p8 = scmp.eq.s32.totalorder %s203_s5, 0  ;;  %s245_s0 = sand.u32 1, %s1058_s22  }
  0x35   : > { %s1236_s26 = scalar_select %p56_p7, %s1058_s22, %s58_s30  }
  0x36   : > { %s1239_s27 = scalar_select %p206_p8, %s1034_s16, %s208_s14  }
  0x37   : > { %1485 = sst [smem:[#allocation23_spill]] %s1236_s26  ;;  %p1246_p12 = pnand %p1470_p9, %p1203_p11 }
  0x38   : > { %1486 = sst [smem:[#allocation24_spill]] %s1239_s27  ;;  %s702_s9 = sshll.u32 %s245_s0, 1 }
  0x39   : > { %s724_s5 = scalar_select %p1203_p11, [#allocation3], [#allocation11] }
  0x3a   : > { %s725_s11 = scalar_select %p1203_p11, %s1066_s24, 0 }
  0x3b   : > { %s1520_s5 = smov (!%p1470_p9, %s724_s5), [#allocation14]  ;;  %s249_s30 = scalar_lea.vmem [#allocation5], %s702_s9 }
  0x3c   : > { %s1522_s11 = smov (!%p1470_p9, %s725_s11), 0  ;;  %s260_s12 = sshll.u32 %s249_s30, 4  ;;  %s1260_s12 = int_to_ptr.vmem [resolvable:$true] %s260_s12 }
  0x3d   : > { %p708_p1 = scmp.ge.s32.totalorder %s1070_s25, 1  ;;  %s250_s14 = sld [smem:[%s1520_s5 + %s1522_s11]] }
  0x3e   : > { %p302_p2 = scmp.lt.s32.totalorder %s1070_s25, 12  ;;  %s1268_s26 = sld [smem:[#allocation4 + %s1066_s24]] }
  0x3f   : > { %s1271_s8 = sld [smem:[#allocation4 + %s1518_s28]]  ;;  %s246_s5 = scalar_lea.sflag [#allocation6], %s245_s0 }
  0x40   : > { %p1263_p3 = pnand %p708_p1, %p302_p2  ;;  %s1489_s2 = sld [smem:[#allocation25_spill]] }
  0x41   : > { %p876_p7 = pneg %p1246_p12 }
  0x42   : > { %s1488_s20 = scalar_select %p1263_p3, 1, 0 }
  0x43   : > { %s720_s22 = sshll.u32 %s250_s14, 5 }
  0x46   : > { %s1276_s9 = scalar_lea.hbm %s1489_s2, %s720_s22  ;;  %s879_s16 = scalar_lea.hbm %s1489_s2, 352 }
  0x47   : > { %s874_s11 = scalar_lea.hbm %s1276_s9, 32  ;;  %p880_p2 = scmp.lt.u32.totalorder %s1276_s9, %s1489_s2 }
  0x48   : > { %p875_p4 = scmp.ne.s32.totalorder %s1276_s9, %s874_s11  ;;  %p881_p9 = scmp.lt.u32.totalorder %s879_s16, %s874_s11 }
  0x49   : > { %p883_p11 = scmp.lt.u32.totalorder %s874_s11, %s1276_s9 }
  0x4a   : > { %p877_p8 = pnand %p876_p7, %p875_p4  ;;  %p882_p10 = por %p881_p9, %p880_p2 }
  0x4c   : > { %p878_p1 = pneg %p877_p8  ;;  %p884_p6 = por %p883_p11, %p882_p10 }
  0x4e   : > { %p885_p5 = pnand %p884_p6, %p878_p1 }
  0x50   : > { %888 = shalt.err (!%p885_p5)
}
  0x51   : > { %s889_s0 = scalar_lea.vmem %s1260_s12, 32  ;;  %s1074_s30 = smov [#allocation5]  }
  0x52   : > { %p890_p4 = scmp.ne.s32.totalorder %s1260_s12, %s889_s0  ;;  %s894_s14 = sshll.u32 %s1074_s30, 4  ;;  %s895_s14 = int_to_ptr.vmem [resolvable:$false] %s894_s14 }
  0x53   : > { %s896_s22 = scalar_lea.vmem %s895_s14, 64  ;;  %p897_p3 = scmp.lt.s32.totalorder %s1260_s12, %s895_s14 }
  0x54   : > { %p892_p8 = pnand %p890_p4, %p876_p7  ;;  %p898_p9 = scmp.lt.s32.totalorder %s896_s22, %s889_s0 }
  0x56   : > { %p893_p0 = pneg %p892_p8  ;;  %p899_p2 = por %p898_p9, %p897_p3 }
  0x58   : > { %p900_p10 = pnand %p899_p2, %p893_p0 }
  0x5a   : > { %903 = shalt.err (!%p900_p10)
}
  0x5b   : > { %741 = dma.hbm_to_vmem [thread:$0]  (!%p1246_p12), %s1276_s9, 32, %s1260_s12, %s246_s5  }
  0x5c   : > { %p101_p0 = scmp.ne.s32.totalorder %s1042_s18, %s1038_s17  ;;  %s88_s29 = sadd.s32 1, %s1046_s19 }
  0x5d   : > { %p1490_p5 = scmp.eq.s32.totalorder %s1070_s25, 0  ;;  %p1491_p6 = scmp.ne.s32.totalorder %s1046_s19, %s1042_s18 }
  0x5e   : > { %s83_s11 = ssub.s32 %s1268_s26, %s1271_s8  ;;  %p1317_p11 = por %p101_p0, %p1209_p13 }
  0x5f   : > { %p97_p3 = por %p1491_p6, %p1490_p5  ;;  %p86_p7 = scmp.eq.s32.totalorder %s83_s11, 0 }
  0x60   : > { %s267_s27 = sand.u32 1, %s1046_s19   ;;  %p1493_p1 = scmp.lt.s32.totalorder %s1070_s25, 11 }
  0x61   : > { %s1329_s12 = scalar_select %p86_p7, %s1046_s19, %s88_s29  }
  0x62   : > { %p1324_p4 = pnand %p1493_p1, %p97_p3  ;;  %s705_s17 = sshll.u32 %s267_s27, 4 }
  0x63   : > { %s727_s9 = scalar_select %p97_p3, [#allocation4], [#allocation12] }
  0x64   : > { %s728_s5 = scalar_select %p97_p3, %s1066_s24, 0 }
  0x65   : > { %p1495_p12 = pmov %p1493_p1  ;;  %p1496_p13 = pmov %p1493_p1 }
  0x66   : > { %s271_s26 = scalar_lea.vmem [#allocation8], %s705_s17  ;;  %s268_s29 = scalar_lea.sflag [#allocation9], %s267_s27 }
  0x67   : > { %s1524_s9 = smov (!%p1495_p12, %s727_s9), [#allocation15]  ;;  %s1526_s5 = smov (!%p1496_p13, %s728_s5), 0 }
  0x68   : > { %s272_s10 = sld [smem:[%s1524_s9 + %s1526_s5]]  ;;  %s282_s8 = sshll.u32 %s271_s26, 4  ;;  %s1336_s8 = int_to_ptr.vmem [resolvable:$true] %s282_s8 }
  0x69   : > { %p906_p9 = pneg %p1324_p4  ;;  %s909_s5 = scalar_lea.hbm %s1461_s3, 512 }
  0x6e   : > { %s721_s30 = sshll.u32 %s272_s10, 8 }
  0x6f   : > { %s1341_s11 = scalar_lea.hbm %s1461_s3, %s721_s30 }
  0x70   : > { %s904_s2 = scalar_lea.hbm %s1341_s11, 256  ;;  %p910_p0 = scmp.lt.u32.totalorder %s1341_s11, %s1461_s3 }
  0x71   : > { %p905_p8 = scmp.ne.s32.totalorder %s1341_s11, %s904_s2  ;;  %p911_p5 = scmp.lt.u32.totalorder %s909_s5, %s904_s2 }
  0x72   : > { %p913_p3 = scmp.lt.u32.totalorder %s904_s2, %s1341_s11 }
  0x73   : > { %p907_p2 = pnand %p906_p9, %p905_p8  ;;  %p912_p6 = por %p911_p5, %p910_p0 }
  0x75   : > { %p908_p10 = pneg %p907_p2  ;;  %p914_p7 = por %p913_p3, %p912_p6 }
  0x77   : > { %p915_p1 = pnand %p914_p7, %p908_p10 }
  0x79   : > { %918 = shalt.err (!%p915_p1)
}
  0x7a   : > { %s919_s27 = scalar_lea.vmem %s1336_s8, 256  ;;  %s1075_s30 = smov [#allocation8]  }
  0x7b   : > { %p920_p12 = scmp.ne.s32.totalorder %s1336_s8, %s919_s27  ;;  %s924_s14 = sshll.u32 %s1075_s30, 4  ;;  %s925_s14 = int_to_ptr.vmem [resolvable:$false] %s924_s14 }
  0x7c   : > { %s926_s22 = scalar_lea.vmem %s925_s14, 512  ;;  %p927_p2 = scmp.lt.s32.totalorder %s1336_s8, %s925_s14 }
  0x7d   : > { %p922_p13 = pnand %p920_p12, %p906_p9  ;;  %p928_p0 = scmp.lt.s32.totalorder %s926_s22, %s919_s27 }
  0x7f   : > { %p923_p8 = pneg %p922_p13  ;;  %p929_p5 = por %p928_p0, %p927_p2 }
  0x81   : > { %p930_p6 = pnand %p929_p5, %p923_p8 }
  0x83   : > { %933 = shalt.err (!%p930_p6)
}
  0x84   : > { %746 = dma.hbm_to_vmem [thread:$0]  (!%p1324_p4), %s1341_s11, 256, %s1336_s8, %s268_s29  }
  0x85   : > { %p1497_p10 = scmp.ne.s32.totalorder %s1488_s20, 0 }
  0x86   : > { %s308_s2 = sand.u32 (!%p1497_p10), 1, %s1054_s21   ;;  %p1498_p9 = scmp.ne.s32.totalorder (!%p1497_p10), %s1482_s13, 0 }
  0x87   : > { %306 = sbr.rel (%p1497_p10) target bundleno = 306 (0x132), region = 32  ;;  %s709_s17 = sshll.u32 (!%p1497_p10), %s308_s2, 1 }
  0x88   : > { %s309_s9 = scalar_lea.sflag (!%p1497_p10), [#allocation6], %s308_s2  ;;  %s312_s5 = scalar_lea.vmem (!%p1497_p10), [#allocation5], %s709_s17 }
  0x8e   : > { %1013 = dma.done.wait (%p1498_p9), %s309_s9, 32  }
  0x8f   : > { %1015 = vsyncadd (%p1498_p9), %s309_s9, 4294967264  ;;  %s317_s0 = sand.u32 1, %s1042_s18  }
  0x90   : > { %s710_s10 = sshll.u32 %s317_s0, 4  ;;  %s318_s26 = scalar_lea.sflag [#allocation9], %s317_s0 }
  0x91   : > { %s321_s8 = scalar_lea.vmem [#allocation8], %s710_s10 }
  0x92   : > { %1017 = dma.done.wait (%p1317_p11), %s318_s26, 256  }
  0x93   : > { %1019 = vsyncadd (%p1317_p11), %s318_s26, 4294967040  ;;  %v422_v0 = vlaneseq  ;;  %v417_v4 = vld [vmem:[%s312_s5] sm:$0x3]  ;;  %v418_v5 = vld [vmem:[%s321_s8] sm:$0xff]  ;;  %vm450_vm0 = vcmask 1040384   ;;  %s384_s13 = sld [smem:[#allocation4 + %s1062_s23]] }
  0x94   : > { %v419_v6 = vld [vmem:[%s321_s8 + $0x8] sm:$0xff]  ;;  %v1076_v15 = vmov 1983009808   ;;  %s377_s20 = sand.u32 1, %s1030_s1   ;;  %p1499_p4 = scmp.ne.s32.totalorder %s1483_s15, 0 }
  0x95   : > { %v423_v1 = vshrl.u32 %v422_v0, 7  ;;  %v432_v16 = vunpack.c.l.s4 %v1076_v15  ;;  %s711_s29 = sshll.u32 %s377_s20, 2  ;;  %s476_s8 = scalar_lea.sflag [#allocation7], %s377_s20 }
  0x96   : > { %s732_s11 = scalar_select %p1499_p4, [#allocation3], [#allocation13] }
  0x97   : > { %v424_v2 = vsub.s32 0, %v423_v1  ;;  %v428_v3 = vsub.s32 1, %v423_v1  ;;  %v433_v17 = vunpack.c.0.s8 %v432_v16  ;;  %s733_s22 = scalar_select %p1499_p4, %s1062_s23, 0 }
  0x98   : > { %s379_s2 = scalar_lea.vmem [#allocation10], %s711_s29 }
  0x99   : > { %v425_v7 = vrot.slane %v417_v4, %v424_v2  ;;  %v429_v8 = vrot.slane %v417_v4, %v428_v3  ;;  %p386_p11 = scmp.lt.s32.totalorder %s384_s13, 1  ;;  %v436_v19 = vsub.s32 %v433_v17, %v423_v1  ;;  %s491_s17 = sld [smem:[%s732_s11 + %s733_s22]] }
  0x9a   : > { %s501_s9 = sshll.u32 %s379_s2, 4  ;;  %s1390_s9 = int_to_ptr.vmem [resolvable:$true] %s501_s9 }
  0x9b   : > { %v443_v9 = vmul.f32 %v425_v7, %v418_v5  ;;  %v444_v10 = vmul.f32 %v429_v8, %v419_v6  ;;  %v451_v11 = vsel %vm450_vm0, %v425_v7, 0.0  ;;  %v452_v12 = vsel %vm450_vm0, %v429_v8, 0.0  ;;  %s1528_s13 = smov (!%p386_p11, %s384_s13), 1 }
  0x9c   : > { %v453_v14 = vadd.f32 %v452_v12, %v451_v11  ;;  %v430_v18 = vcombine.low %v425_v7, %v429_v8  ;;  %s722_s16 = sshll.u32 %s1528_s13, 2  ;;  %s934_s13 = scalar_lea.vmem %s1390_s9, 64 }
  0x9d   : > { %v445_v13 = vadd.f32 %v444_v10, %v443_v9  ;;  %s393_s14 = scalar_lea.vmem %s1462_s4, %s722_s16  ;;  %p935_p3 = scmp.ne.s32.totalorder %s1390_s9, %s934_s13 }
  0x9e   : > { %v437_v20 = vrot.slane %v430_v18, %v436_v19  ;;  %v420_v21 = vld [vmem:[%s393_s14] sm:$0xf]  ;;  %s1077_s16 = smov [#allocation10]  }
  0x9f   : > { %446 = vadd.xlane.f32.xlu0 %v445_v13  ;;  %s723_s5 = sshll.u32 %s491_s17, 6  ;;  %p936_p7 = pnand %p935_p3, %p1499_p4 }
  0xa0   : > { %v439_v22 = vmul.f32 %v437_v20, %v420_v21  ;;  %s499_s26 = scalar_lea.hbm %s1465_s7, %s723_s5  ;;  %s938_s29 = sshll.u32 %s1077_s16, 4  ;;  %s939_s29 = int_to_ptr.vmem [resolvable:$false] %s938_s29 }
  0xa1   : > { %p937_p1 = pneg %p936_p7  ;;  %s940_s11 = scalar_lea.vmem %s939_s29, 128 }
  0xa2   : > { %440 = vst [vmem:[%s379_s2] sm:$0xf] %v439_v22  ;;  %p941_p12 = scmp.lt.s32.totalorder %s1390_s9, %s939_s29  ;;  %p942_p13 = scmp.lt.s32.totalorder %s940_s11, %s934_s13 }
  0xa3   : > { %454 = vadd.xlane.f32.xlu0 %v453_v14 }
  0xa4   : > { %p943_p8 = por %p942_p13, %p941_p12 }
  0xa6   : > { %p944_p2 = pnand %p943_p8, %p937_p1 }
  0xa8   : > { %947 = shalt.err (!%p944_p2)
}
  0xa9   : > { %s948_s27 = scalar_lea.hbm %s499_s26, 64  ;;  %s952_s14 = scalar_lea.hbm %s1465_s7, 704 }
  0xaa   : > { %p949_p0 = scmp.ne.s32.totalorder %s499_s26, %s948_s27  ;;  %p953_p10 = scmp.lt.u32.totalorder %s499_s26, %s1465_s7 }
  0xab   : > { %p954_p9 = scmp.lt.u32.totalorder %s952_s14, %s948_s27  ;;  %p956_p3 = scmp.lt.u32.totalorder %s948_s27, %s499_s26 }
  0xac   : > { %p950_p5 = pnand %p949_p0, %p1499_p4 }
  0xad   : > { %p955_p11 = por %p954_p9, %p953_p10 }
  0xae   : > { %p951_p6 = pneg %p950_p5 }
  0xaf   : > { %p957_p7 = por %p956_p3, %p955_p11 }
  0xb1   : > { %p958_p1 = pnand %p957_p7, %p951_p6 }
  0xb3   : > { %961 = shalt.err (!%p958_p1)
}
  0xb4   : > { %734 = dma.vmem_to_hbm [thread:$0]  (%p1499_p4), %s1390_s9, 64, %s499_s26, %s476_s8   ;;  %vm448_vm1 = vcmask 7168   ;;  %vm456_vm2 = vcmask 0  }
  0xb5   : > { %s396_s17 = sld [smem:[#allocation3 + %s1062_s23]] }
  0xb6   : > { %s406_s5 = sld [smem:[#allocation3 + %s1062_s23]] }
  0xb7   : > { %s1500_s16 = sld [smem:[#allocation26_spill]]  ;;  %s1501_s27 = sld [smem:[#allocation27_spill]] }
  0xbb   : > { %p399_p12 = scmp.lt.s32.totalorder %s396_s17, 10 }
  0xbc   : > { %p409_p13 = scmp.lt.s32.totalorder %s406_s5, 10 }
  0xbd   : > { %s1530_s17 = smov (!%p399_p12, %s396_s17), 10 }
  0xbe   : > { %s714_s0 = sshll.u32 %s1530_s17, 3  ;;  %s1532_s5 = smov (!%p409_p13, %s406_s5), 10 }
  0xbf   : > { %s404_s29 = scalar_lea.vmem %s1500_s16, %s714_s0  ;;  %s413_s20 = scalar_lea.vmem %s1501_s27, %s1532_s5 }
 0x12c   : > { %v447_v23 = vpop.xlane.xlu0 %446 }
 0x12d   : > { %449 = vst.msk [vmem:[%s404_s29] sm:$0xff] %vm448_vm1, %v447_v23 }
 0x130   : > { %v455_v24 = vpop.xlane.xlu0 %454 }
 0x131   : > { %457 = vst.msk [vmem:[%s413_s20] sm:$0x1] %vm456_vm2, %v455_v24 }
 0x132 PF: > { %s1502_s23 = sld [smem:[#allocation20_spill]]  ;;  %p752_p4 = scmp.ge.s32.totalorder %s1070_s25, 2 }
 0x133   : > { %p1503_p8 = scmp.ne.s32.totalorder %s1484_s6, 0 }
 0x135   : > { %p748_p2 = pnand %p752_p4, %p1503_p8 }
 0x138   : > { %s536_s9 = sand.u32 1, %s1502_s23  }
 0x139   : > { %s537_s26 = scalar_lea.sflag [#allocation7], %s536_s9 }
 0x13a   : > { %1021 = dma.done.wait (!%p748_p2), %s537_s26, 64  }
 0x13b   : > { %1023 = vsyncadd (!%p748_p2), %s537_s26, 4294967232  ;;  %s35_s25 = sadd.s32 1, %s1070_s25   ;;  %s1504_s8 = sld [smem:[#allocation21_spill]] }
 0x13c   : > { %p32_p0 = scmp.ge.s32.totalorder %s35_s25, 13   ;;  %s1505_s16 = sld [smem:[#allocation24_spill]] }
 0x13d   : > { %s1506_s30 = sld [smem:[#allocation22_spill]]  ;;  %s1507_s22 = sld [smem:[#allocation23_spill]] }
 0x13e   : > { %s1508_s0 = smov %s1030_s1  ;;  %s1510_s17 = smov %s1042_s18 }
 0x13f   : > { %s1511_s18 = smov %s1046_s19  ;;  %s1512_s19 = smov %s1329_s12 }
 0x140   : > { %s1513_s20 = smov %s1054_s21  ;;  %s1515_s23 = smov %s1066_s24 }
 0x141   : > { %s1509_s1 = smov %s1504_s8  ;;  %s1516_s24 = smov %s1518_s28 }
 0x142   :  { %34 = sbr.rel (!%p32_p0) target bundleno = 34 (0x22), region = 117 }
 0x143   : > { %s1514_s21 = smov %s1506_s30 }
 0x149   :  { %542 = vsyncpa [#allocation6], 1 }
 0x14a   :  { %544 = vsyncpa [#allocation6 + $0x1], 1 }
 0x14b   :  { %545 = vsyncpa [#allocation9], 1 }
 0x14c   :  { %547 = vsyncpa [#allocation9 + $0x1], 1 }
 0x14d   :  { %548 = vsyncpa [#allocation7], 1 }
 0x14e   :  { %550 = vsyncpa [#allocation7 + $0x1], 1 }

</bundles_post_ra>
